<compile_context>
chip_gen: v6e
topology: v6e:2x2x1
jax: 0.10.0
libtpu: 0.0.40
codegen_flags: <defaults>
</compile_context>

<pallas_src>
import functools

import jax
import jax.numpy as jnp
from jax import lax
from jax.experimental import pallas as pl
from jax.experimental.pallas import tpu as pltpu


def _round_up(x, m):
    return (x + m - 1) // m * m


def _label_smooth_ce_kernel(logits_ref, targets_ref, out_ref,
                            m_ref, l_ref, sumx_ref, picked_ref, *,
                            epsilon, num_classes, n_true, tile_n, tile_c):
    i = pl.program_id(0)           # batch tile
    j = pl.program_id(1)           # class tile (innermost reduction axis)
    n_ct = pl.num_programs(1)

    neg_big = jnp.float32(-1e30)

    @pl.when(jnp.logical_and(i == 0, j == 0))
    def _():
        out_ref[...] = jnp.zeros_like(out_ref)

    @pl.when(j == 0)
    def _():
        m_ref[...] = jnp.full_like(m_ref, neg_big)
        l_ref[...] = jnp.zeros_like(l_ref)
        sumx_ref[...] = jnp.zeros_like(sumx_ref)
        picked_ref[...] = jnp.zeros_like(picked_ref)

    x = logits_ref[...].astype(jnp.float32)                   # (tile_n, tile_c)

    col_ids = lax.broadcasted_iota(jnp.int32, x.shape, 1) + j * tile_c
    col_valid = col_ids < num_classes                          # mask padded classes

    # --- online (streaming) log-sum-exp over class tiles ---
    x_m = jnp.where(col_valid, x, neg_big)
    blk_max = jnp.max(x_m, axis=1, keepdims=True)              # (tile_n, 1)
    m_new = jnp.maximum(m_ref[...], blk_max)
    l_ref[...] = (l_ref[...] * jnp.exp(m_ref[...] - m_new)
                  + jnp.sum(jnp.exp(x_m - m_new), axis=1, keepdims=True))
    m_ref[...] = m_new

    # --- running sum_c x[n,c] and x[n, target_n] (iota-compare, no one-hot) ---
    sumx_ref[...] += jnp.sum(jnp.where(col_valid, x, 0.0), axis=1, keepdims=True)
    tgt = targets_ref[...]                                     # (tile_n, 1) int32
    picked_ref[...] += jnp.sum(jnp.where(col_ids == tgt, x, 0.0),
                               axis=1, keepdims=True)

    @pl.when(j == n_ct - 1)
    def _():
        lse = m_ref[...] + jnp.log(l_ref[...])                 # (tile_n, 1)
        row_loss = (lse
                    - (1.0 - epsilon) * picked_ref[...]
                    - (epsilon / num_classes) * sumx_ref[...])
        # Mask padded batch rows; divide by the true global batch size.
        row_ids = lax.broadcasted_iota(jnp.int32, row_loss.shape, 0) + i * tile_n
        row_valid = (row_ids < n_true).astype(jnp.float32)
        out_ref[...] += (jnp.sum(row_loss * row_valid, axis=0, keepdims=True)
                         * jnp.float32(1.0 / n_true))


def cross_entropy_label_smooth(logits, targets, num_classes, epsilon=0.1,
                               tile_n=None, tile_c=None):
    """logits: [N, C] float (f32 or bf16), targets: [N] int class indices -> scalar loss."""
    n, c = logits.shape
    assert c == num_classes
    dtype_bytes = jnp.dtype(logits.dtype).itemsize

    # Class tile: full (lane-padded) class row when it fits, else cap at 2048
    # lanes and stream class tiles with the online LSE.
    c_lane = _round_up(c, 128)
    if tile_c is None:
        tile_c = min(c_lane, 2048)
    tile_c = _round_up(int(tile_c), 128)
    c_pad = _round_up(c, tile_c)

    # Batch tile: keep one logits tile around ~2 MiB so the input double
    # buffers + the f32 cast fit comfortably in the 32 MiB scoped-VMEM limit
    # on v5e/v6e/v7x.
    if tile_n is None:
        budget_rows = max(16, (2 * 1024 * 1024) // (tile_c * dtype_bytes))
        tile_n = min(1024, budget_rows, _round_up(n, 16))
    tile_n = max(16, _round_up(int(tile_n), 16))
    n_pad = _round_up(n, tile_n)

    grid = (n_pad // tile_n, c_pad // tile_c)

    targets_2d = targets.astype(jnp.int32).reshape(n, 1)
    if (n_pad, c_pad) != (n, c):
        logits = jnp.pad(logits, ((0, n_pad - n), (0, c_pad - c)))
        targets_2d = jnp.pad(targets_2d, ((0, n_pad - n), (0, 0)))

    kernel = functools.partial(
        _label_smooth_ce_kernel,
        epsilon=float(epsilon),
        num_classes=int(num_classes),
        n_true=int(n),
        tile_n=int(tile_n),
        tile_c=int(tile_c),
    )

    out = pl.pallas_call(
        kernel,
        out_shape=jax.ShapeDtypeStruct((1, 1), jnp.float32),
        grid=grid,
        in_specs=[
            pl.BlockSpec((tile_n, tile_c), lambda i, j: (i, j)),  # logits tile
            pl.BlockSpec((tile_n, 1), lambda i, j: (i, 0)),       # targets tile
        ],
        out_specs=pl.BlockSpec((1, 1), lambda i, j: (0, 0)),      # resident scalar acc
        scratch_shapes=[
            pltpu.VMEM((tile_n, 1), jnp.float32),  # m  (running max)
            pltpu.VMEM((tile_n, 1), jnp.float32),  # l  (running sum of exp)
            pltpu.VMEM((tile_n, 1), jnp.float32),  # sum_c x[n, c]
            pltpu.VMEM((tile_n, 1), jnp.float32),  # x[n, target_n]
        ],
        compiler_params=pltpu.CompilerParams(
            dimension_semantics=("arbitrary", "arbitrary"),  # both axes feed the accumulators
            vmem_limit_bytes=32 * 1024 * 1024,
        ),
    )(logits, targets_2d)
    return out[0, 0]


def _reference(logits, targets, num_classes, epsilon=0.1):
    log_probs = jax.nn.log_softmax(logits.astype(jnp.float32), axis=1)
    one_hot = jax.nn.one_hot(targets, num_classes, dtype=jnp.float32)
    smoothed = (1.0 - epsilon) * one_hot + epsilon / num_classes
    return jnp.sum(jnp.mean(-smoothed * log_probs, axis=0))


if __name__ == "__main__":
    key = jax.random.PRNGKey(0)
    k1, k2, k3, k4, k5, k6 = jax.random.split(key, 6)
    epsilon = 0.1

    # Case 1: aligned shapes, f32 logits (single tile on both axes).
    num_classes = 128
    batch = 8
    logits = jax.random.normal(k1, (batch, num_classes), dtype=jnp.float32)
    targets = jax.random.randint(k2, (batch,), 0, num_classes, dtype=jnp.int32)
    loss = jax.block_until_ready(
        cross_entropy_label_smooth(logits, targets, num_classes, epsilon))
    ref = _reference(logits, targets, num_classes, epsilon)
    assert jnp.allclose(loss, ref, rtol=1e-5, atol=1e-5), (loss, ref)

    # Case 2: ragged shapes + bf16 logits (padding/masking + dtype pass-through).
    num_classes2 = 200
    batch2 = 10
    logits2 = jax.random.normal(
        k3, (batch2, num_classes2), dtype=jnp.float32).astype(jnp.bfloat16)
    targets2 = jax.random.randint(k4, (batch2,), 0, num_classes2, dtype=jnp.int32)
    loss2 = jax.block_until_ready(
        cross_entropy_label_smooth(logits2, targets2, num_classes2, epsilon))
    ref2 = _reference(logits2, targets2, num_classes2, epsilon)
    assert jnp.allclose(loss2, ref2, rtol=2e-3, atol=2e-3), (loss2, ref2)

    # Case 3: force multiple batch AND class tiles (exercises the online LSE
    # and the per-batch-tile finalize path) at small shapes.
    num_classes3 = 300
    batch3 = 40
    logits3 = jax.random.normal(k5, (batch3, num_classes3), dtype=jnp.float32)
    targets3 = jax.random.randint(k6, (batch3,), 0, num_classes3, dtype=jnp.int32)
    loss3 = jax.block_until_ready(
        cross_entropy_label_smooth(logits3, targets3, num_classes3, epsilon,
                                   tile_n=16, tile_c=128))
    ref3 = _reference(logits3, targets3, num_classes3, epsilon)
    assert jnp.allclose(loss3, ref3, rtol=1e-4, atol=1e-5), (loss3, ref3)

    print("KERNEL_OK")
</pallas_src>

<mosaic_0001>
module attributes {stable_mosaic.version = 11 : i64} {
  func.func @_label_smooth_ce_kernel(%arg0: i32, %arg1: i32, %arg2: memref<16x128xf32, #tpu.memory_space<vmem>>, %arg3: memref<16x1xi32, #tpu.memory_space<vmem>>, %arg4: memref<1x1xf32, #tpu.memory_space<vmem>>, %arg5: memref<16x1xf32, #tpu.memory_space<vmem>>, %arg6: memref<16x1xf32, #tpu.memory_space<vmem>>, %arg7: memref<16x1xf32, #tpu.memory_space<vmem>>, %arg8: memref<16x1xf32, #tpu.memory_space<vmem>>) attributes {dimension_semantics = [#tpu.dimension_semantics<arbitrary>, #tpu.dimension_semantics<arbitrary>], iteration_bounds = array<i64: 1, 1>, scalar_prefetch = 0 : i64, scratch_operands = 4 : i64, tpu.core_type = #tpu.core_type<tc>, window_params = [{transform_indices = @transform_0, window_bounds = array<i64: 16, 128>}, {transform_indices = @transform_1, window_bounds = array<i64: 16, 1>}, {pipeline_mode = #tpu.pipeline_mode<synchronous>, transform_indices = @transform_2, window_bounds = array<i64: 1, 1>}]} {
    %c0_i32 = arith.constant 0 : i32
    %0 = arith.cmpi eq, %arg0, %c0_i32 : i32
    %c0_i32_0 = arith.constant 0 : i32
    %1 = arith.cmpi eq, %arg1, %c0_i32_0 : i32
    %2 = arith.andi %0, %1 : i1
    %3 = arith.extui %2 : i1 to i32
    %c0_i32_1 = arith.constant 0 : i32
    %4 = arith.cmpi ne, %3, %c0_i32_1 : i32
    scf.if %4 {
      %cst_35 = arith.constant 0.000000e+00 : f32
      %54 = vector.broadcast %cst_35 : f32 to vector<1x1xf32>
      %c0_36 = arith.constant 0 : index
      %c0_37 = arith.constant 0 : index
      %55 = vector.load %arg4[%c0_36, %c0_37] : memref<1x1xf32, #tpu.memory_space<vmem>>, vector<1x1xf32>
      tpu.vector_store %arg4[%c0_36, %c0_37], %54 {strides = array<i32>} : memref<1x1xf32, #tpu.memory_space<vmem>>, vector<1x1xf32>,
    } else {
    }
    %c0_i32_2 = arith.constant 0 : i32
    %5 = arith.cmpi eq, %arg1, %c0_i32_2 : i32
    %6 = arith.extui %5 : i1 to i32
    %cst = arith.constant -1.000000e+30 : f32
    %c0_i32_3 = arith.constant 0 : i32
    %7 = arith.cmpi ne, %6, %c0_i32_3 : i32
    scf.if %7 {
      %54 = vector.broadcast %cst : f32 to vector<16x1xf32>
      %c0_35 = arith.constant 0 : index
      %c0_36 = arith.constant 0 : index
      %55 = vector.load %arg5[%c0_35, %c0_36] : memref<16x1xf32, #tpu.memory_space<vmem>>, vector<16x1xf32>
      tpu.vector_store %arg5[%c0_35, %c0_36], %54 {strides = array<i32>} : memref<16x1xf32, #tpu.memory_space<vmem>>, vector<16x1xf32>,
      %cst_37 = arith.constant 0.000000e+00 : f32
      %56 = vector.broadcast %cst_37 : f32 to vector<16x1xf32>
      %c0_38 = arith.constant 0 : index
      %c0_39 = arith.constant 0 : index
      %57 = vector.load %arg6[%c0_38, %c0_39] : memref<16x1xf32, #tpu.memory_space<vmem>>, vector<16x1xf32>
      tpu.vector_store %arg6[%c0_38, %c0_39], %56 {strides = array<i32>} : memref<16x1xf32, #tpu.memory_space<vmem>>, vector<16x1xf32>,
      %cst_40 = arith.constant 0.000000e+00 : f32
      %58 = vector.broadcast %cst_40 : f32 to vector<16x1xf32>
      %c0_41 = arith.constant 0 : index
      %c0_42 = arith.constant 0 : index
      %59 = vector.load %arg7[%c0_41, %c0_42] : memref<16x1xf32, #tpu.memory_space<vmem>>, vector<16x1xf32>
      tpu.vector_store %arg7[%c0_41, %c0_42], %58 {strides = array<i32>} : memref<16x1xf32, #tpu.memory_space<vmem>>, vector<16x1xf32>,
      %cst_43 = arith.constant 0.000000e+00 : f32
      %60 = vector.broadcast %cst_43 : f32 to vector<16x1xf32>
      %c0_44 = arith.constant 0 : index
      %c0_45 = arith.constant 0 : index
      %61 = vector.load %arg8[%c0_44, %c0_45] : memref<16x1xf32, #tpu.memory_space<vmem>>, vector<16x1xf32>
      tpu.vector_store %arg8[%c0_44, %c0_45], %60 {strides = array<i32>} : memref<16x1xf32, #tpu.memory_space<vmem>>, vector<16x1xf32>,
    } else {
    }
    %c0 = arith.constant 0 : index
    %c0_4 = arith.constant 0 : index
    %8 = vector.load %arg2[%c0, %c0_4] : memref<16x128xf32, #tpu.memory_space<vmem>>, vector<16x128xf32>
    %9 = tpu.iota {dimensions = array<i32: 1>} : vector<16x128xi32>
    %c128_i32 = arith.constant 128 : i32
    %10 = arith.muli %arg1, %c128_i32 : i32
    %11 = vector.broadcast %10 : i32 to vector<16x128xi32>
    %12 = arith.addi %9, %11 : vector<16x128xi32>
    %c128_i32_5 = arith.constant 128 : i32
    %13 = vector.broadcast %c128_i32_5 : i32 to vector<16x128xi32>
    %14 = arith.cmpi slt, %12, %13 : vector<16x128xi32>
    %cst_6 = arith.constant -1.000000e+30 : f32
    %15 = vector.broadcast %cst_6 : f32 to vector<16x128xf32>
    %16 = arith.select %14, %8, %15 : vector<16x128xi1>, vector<16x128xf32>
    %cst_7 = arith.constant dense<0xFF800000> : vector<16xf32>
    %17 = vector.multi_reduction <maximumf>, %16, %cst_7 [1] : vector<16x128xf32> to vector<16xf32>
    %18 = vector.shape_cast %17 : vector<16xf32> to vector<16x1xf32>
    %c0_8 = arith.constant 0 : index
    %c0_9 = arith.constant 0 : index
    %19 = vector.load %arg5[%c0_8, %c0_9] : memref<16x1xf32, #tpu.memory_space<vmem>>, vector<16x1xf32>
    %20 = arith.maximumf %19, %18 : vector<16x1xf32>
    %c0_10 = arith.constant 0 : index
    %c0_11 = arith.constant 0 : index
    %21 = vector.load %arg6[%c0_10, %c0_11] : memref<16x1xf32, #tpu.memory_space<vmem>>, vector<16x1xf32>
    %c0_12 = arith.constant 0 : index
    %c0_13 = arith.constant 0 : index
    %22 = vector.load %arg5[%c0_12, %c0_13] : memref<16x1xf32, #tpu.memory_space<vmem>>, vector<16x1xf32>
    %23 = arith.subf %22, %20 : vector<16x1xf32>
    %24 = math.exp %23 : vector<16x1xf32>
    %25 = arith.mulf %21, %24 : vector<16x1xf32>
    %26 = vector.broadcast %20 : vector<16x1xf32> to vector<16x128xf32>
    %27 = arith.subf %16, %26 : vector<16x128xf32>
    %28 = math.exp %27 : vector<16x128xf32>
    %cst_14 = arith.constant dense<0.000000e+00> : vector<16xf32>
    %29 = vector.multi_reduction <add>, %28, %cst_14 [1] : vector<16x128xf32> to vector<16xf32>
    %30 = vector.shape_cast %29 : vector<16xf32> to vector<16x1xf32>
    %31 = arith.addf %25, %30 : vector<16x1xf32>
    %c0_15 = arith.constant 0 : index
    %c0_16 = arith.constant 0 : index
    %32 = vector.load %arg6[%c0_15, %c0_16] : memref<16x1xf32, #tpu.memory_space<vmem>>, vector<16x1xf32>
    tpu.vector_store %arg6[%c0_15, %c0_16], %31 {strides = array<i32>} : memref<16x1xf32, #tpu.memory_space<vmem>>, vector<16x1xf32>,
    %c0_17 = arith.constant 0 : index
    %c0_18 = arith.constant 0 : index
    %33 = vector.load %arg5[%c0_17, %c0_18] : memref<16x1xf32, #tpu.memory_space<vmem>>, vector<16x1xf32>
    tpu.vector_store %arg5[%c0_17, %c0_18], %20 {strides = array<i32>} : memref<16x1xf32, #tpu.memory_space<vmem>>, vector<16x1xf32>,
    %c0_19 = arith.constant 0 : index
    %c0_20 = arith.constant 0 : index
    %34 = vector.load %arg7[%c0_19, %c0_20] : memref<16x1xf32, #tpu.memory_space<vmem>>, vector<16x1xf32>
    %cst_21 = arith.constant 0.000000e+00 : f32
    %35 = vector.broadcast %cst_21 : f32 to vector<16x128xf32>
    %36 = arith.select %14, %8, %35 : vector<16x128xi1>, vector<16x128xf32>
    %cst_22 = arith.constant dense<0.000000e+00> : vector<16xf32>
    %37 = vector.multi_reduction <add>, %36, %cst_22 [1] : vector<16x128xf32> to vector<16xf32>
    %38 = vector.shape_cast %37 : vector<16xf32> to vector<16x1xf32>
    %39 = arith.addf %34, %38 : vector<16x1xf32>
    %c0_23 = arith.constant 0 : index
    %c0_24 = arith.constant 0 : index
    %40 = vector.load %arg7[%c0_23, %c0_24] : memref<16x1xf32, #tpu.memory_space<vmem>>, vector<16x1xf32>
    tpu.vector_store %arg7[%c0_23, %c0_24], %39 {strides = array<i32>} : memref<16x1xf32, #tpu.memory_space<vmem>>, vector<16x1xf32>,
    %c0_25 = arith.constant 0 : index
    %c0_26 = arith.constant 0 : index
    %41 = vector.load %arg3[%c0_25, %c0_26] : memref<16x1xi32, #tpu.memory_space<vmem>>, vector<16x1xi32>
    %c0_27 = arith.constant 0 : index
    %c0_28 = arith.constant 0 : index
    %42 = vector.load %arg8[%c0_27, %c0_28] : memref<16x1xf32, #tpu.memory_space<vmem>>, vector<16x1xf32>
    %43 = vector.broadcast %41 : vector<16x1xi32> to vector<16x128xi32>
    %44 = arith.cmpi eq, %12, %43 : vector<16x128xi32>
    %cst_29 = arith.constant 0.000000e+00 : f32
    %45 = vector.broadcast %cst_29 : f32 to vector<16x128xf32>
    %46 = arith.select %44, %8, %45 : vector<16x128xi1>, vector<16x128xf32>
    %cst_30 = arith.constant dense<0.000000e+00> : vector<16xf32>
    %47 = vector.multi_reduction <add>, %46, %cst_30 [1] : vector<16x128xf32> to vector<16xf32>
    %48 = vector.shape_cast %47 : vector<16xf32> to vector<16x1xf32>
    %49 = arith.addf %42, %48 : vector<16x1xf32>
    %c0_31 = arith.constant 0 : index
    %c0_32 = arith.constant 0 : index
    %50 = vector.load %arg8[%c0_31, %c0_32] : memref<16x1xf32, #tpu.memory_space<vmem>>, vector<16x1xf32>
    tpu.vector_store %arg8[%c0_31, %c0_32], %49 {strides = array<i32>} : memref<16x1xf32, #tpu.memory_space<vmem>>, vector<16x1xf32>,
    %c0_i32_33 = arith.constant 0 : i32
    %51 = arith.cmpi eq, %arg1, %c0_i32_33 : i32
    %52 = arith.extui %51 : i1 to i32
    %c0_i32_34 = arith.constant 0 : i32
    %53 = arith.cmpi ne, %52, %c0_i32_34 : i32
    scf.if %53 {
      %c0_35 = arith.constant 0 : index
      %c0_36 = arith.constant 0 : index
      %54 = vector.load %arg5[%c0_35, %c0_36] : memref<16x1xf32, #tpu.memory_space<vmem>>, vector<16x1xf32>
      %c0_37 = arith.constant 0 : index
      %c0_38 = arith.constant 0 : index
      %55 = vector.load %arg6[%c0_37, %c0_38] : memref<16x1xf32, #tpu.memory_space<vmem>>, vector<16x1xf32>
      %56 = math.log %55 : vector<16x1xf32>
      %57 = arith.addf %54, %56 : vector<16x1xf32>
      %c0_39 = arith.constant 0 : index
      %c0_40 = arith.constant 0 : index
      %58 = vector.load %arg8[%c0_39, %c0_40] : memref<16x1xf32, #tpu.memory_space<vmem>>, vector<16x1xf32>
      %cst_41 = arith.constant 0.899999976 : f32
      %59 = vector.broadcast %cst_41 : f32 to vector<16x1xf32>
      %60 = arith.mulf %59, %58 : vector<16x1xf32>
      %61 = arith.subf %57, %60 : vector<16x1xf32>
      %c0_42 = arith.constant 0 : index
      %c0_43 = arith.constant 0 : index
      %62 = vector.load %arg7[%c0_42, %c0_43] : memref<16x1xf32, #tpu.memory_space<vmem>>, vector<16x1xf32>
      %cst_44 = arith.constant 7.812500e-04 : f32
      %63 = vector.broadcast %cst_44 : f32 to vector<16x1xf32>
      %64 = arith.mulf %63, %62 : vector<16x1xf32>
      %65 = arith.subf %61, %64 : vector<16x1xf32>
      %66 = tpu.iota {dimensions = array<i32: 0>} : vector<16x1xi32>
      %c16_i32 = arith.constant 16 : i32
      %67 = arith.muli %arg0, %c16_i32 : i32
      %68 = vector.broadcast %67 : i32 to vector<16x1xi32>
      %69 = arith.addi %66, %68 : vector<16x1xi32>
      %c8_i32 = arith.constant 8 : i32
      %70 = vector.broadcast %c8_i32 : i32 to vector<16x1xi32>
      %71 = arith.cmpi slt, %69, %70 : vector<16x1xi32>
      %72 = arith.extui %71 : vector<16x1xi1> to vector<16x1xi32>
      %73 = arith.sitofp %72 : vector<16x1xi32> to vector<16x1xf32>
      %c0_45 = arith.constant 0 : index
      %c0_46 = arith.constant 0 : index
      %74 = vector.load %arg4[%c0_45, %c0_46] : memref<1x1xf32, #tpu.memory_space<vmem>>, vector<1x1xf32>
      %75 = arith.mulf %65, %73 : vector<16x1xf32>
      %cst_47 = arith.constant dense<0.000000e+00> : vector<1xf32>
      %76 = vector.multi_reduction <add>, %75, %cst_47 [0] : vector<16x1xf32> to vector<1xf32>
      %77 = vector.shape_cast %76 : vector<1xf32> to vector<1x1xf32>
      %cst_48 = arith.constant 1.250000e-01 : f32
      %78 = vector.broadcast %cst_48 : f32 to vector<1x1xf32>
      %79 = arith.mulf %77, %78 : vector<1x1xf32>
      %80 = arith.addf %74, %79 : vector<1x1xf32>
      %c0_49 = arith.constant 0 : index
      %c0_50 = arith.constant 0 : index
      %81 = vector.load %arg4[%c0_49, %c0_50] : memref<1x1xf32, #tpu.memory_space<vmem>>, vector<1x1xf32>
      tpu.vector_store %arg4[%c0_49, %c0_50], %80 {strides = array<i32>} : memref<1x1xf32, #tpu.memory_space<vmem>>, vector<1x1xf32>,
    } else {
    }
    return
  }
  func.func @transform_0(%arg0: i32, %arg1: i32) -> (i32, i32) {
    %c0_i32 = arith.constant 0 : i32
    return %arg0, %arg1 : i32, i32
  }
  func.func @transform_1(%arg0: i32, %arg1: i32) -> (i32, i32) {
    %c0_i32 = arith.constant 0 : i32
    %c0_i32_0 = arith.constant 0 : i32
    return %arg0, %c0_i32 : i32, i32
  }
  func.func @transform_2(%arg0: i32, %arg1: i32) -> (i32, i32) {
    %c0_i32 = arith.constant 0 : i32
    %c0_i32_0 = arith.constant 0 : i32
    %c0_i32_1 = arith.constant 0 : i32
    return %c0_i32, %c0_i32_0 : i32, i32
  }
}

</mosaic_0001>

<bundles_post_ra>
// kernel: tpu_custom_call.1
= control target key start
LH: loop header
LB: loop body
LE: loop exit
PB: predicated region body
PF: predicated region fallthrough
CT: control target
= control target key end

     0   :  { %s283_s0 = inlined_call_operand.vmem [shape: f32[16,128], index: 0, kind: input, shape index: {}]   ;;  %s284_s1 = inlined_call_operand.vmem [shape: s32[16,1], index: 1, kind: input, shape index: {}]   ;;  %s285_s2 = inlined_call_operand.hbm [shape: f32[1,1], index: 2, kind: output, shape index: {}]  }
   0x1   :  { %v33_v0 = vld [vmem:[%s283_s0 + $0x8] sm:$0xff] }
   0x2   :  { %7 = vsyncpa [#allocation7], 0  ;;  %44 = vmax.xlane.f32.xlu0 %v33_v0  ;;  %v32_v1 = vld [vmem:[%s283_s0] sm:$0xff]  ;;  %vm23_vm0 = vcmask 7168   ;;  %v229_v2 = vmov -1e+30   ;;  %v34_v15 = vlaneseq }
   0x3   :  { %25 = vst.msk [vmem:[#allocation2 + $0x8] sm:$0xff] %vm23_vm0, %v229_v2  ;;  %24 = vst.msk [vmem:[#allocation2] sm:$0xff] %vm23_vm0, %v229_v2  ;;  %v230_v3 = vmov 0   ;;  %v231_v4 = vmov 0.0   ;;  %v100_v5 = vld [vmem:[%s284_s1 + $0x8] sm:$0xff]  ;;  %v99_v14 = vld [vmem:[%s284_s1] sm:$0xff] }
   0x4   :  { %193 = vset.pattern.permute.xlu1 %v230_v3  ;;  %194 = vset.pattern.permute.xlu0 %v230_v3  ;;  %27 = vst.msk [vmem:[#allocation3 + $0x8] sm:$0xff] %vm23_vm0, %v231_v4  ;;  %26 = vst.msk [vmem:[#allocation3] sm:$0xff] %vm23_vm0, %v231_v4  ;;  %v35_v16 = vand.u32 127, %v34_v15  ;;  %vm18_vm3 = vcmask 0   ;;  %s232_s1 = smov [#allocation6]  }
   0x5   :  { %28 = vst.msk [vmem:[#allocation4] sm:$0xff] %vm23_vm0, %v231_v4  ;;  %29 = vst.msk [vmem:[#allocation4 + $0x8] sm:$0xff] %vm23_vm0, %v231_v4  ;;  %s181_s16 = sshll.u32 %s232_s1, 4  ;;  %s182_s16 = int_to_ptr.vmem [resolvable:$true] %s181_s16 }
   0x6   :  { %42 = vmax.xlane.f32.xlu0 %v32_v1  ;;  %30 = vst.msk [vmem:[#allocation5] sm:$0xff] %vm23_vm0, %v231_v4  ;;  %31 = vst.msk [vmem:[#allocation5 + $0x8] sm:$0xff] %vm23_vm0, %v231_v4  ;;  %s207_s17 = scalar_lea.vmem %s182_s16, 16  ;;  %s211_s18 = scalar_lea.vmem %s182_s16, 32 }
   0x7   :  { %19 = vst.msk [vmem:[#allocation6] sm:$0x1] %vm18_vm3, %v231_v4  ;;  %p208_p0 = scmp.ne.s32.totalorder %s182_s16, %s207_s17  ;;  %p212_p1 = scmp.lt.s32.totalorder %s182_s16, %s182_s16 }
   0x8   :  { %p213_p2 = scmp.lt.s32.totalorder %s211_s18, %s207_s17 }
   0xa   :  { %v47_v6 = vld [vmem:[#allocation2 + $0x8] sm:$0xff]  ;;  %v46_v9 = vld [vmem:[#allocation2] sm:$0xff]  ;;  %p214_p3 = por %p213_p2, %p212_p1 }
   0xb   :  { %v51_v35 = vld [vmem:[#allocation3 + $0x8] sm:$0xff]  ;;  %v50_v39 = vld [vmem:[#allocation3] sm:$0xff] }
   0xc   :  { %v88_v44 = vld [vmem:[#allocation4 + $0x8] sm:$0xff]  ;;  %v87_v51 = vld [vmem:[#allocation4] sm:$0xff]  ;;  %p215_p4 = pnand %p214_p3, %p208_p0 }
   0xd   :  { %v102_v30 = vld [vmem:[#allocation5 + $0x8] sm:$0xff]  ;;  %v101_v47 = vld [vmem:[#allocation5] sm:$0xff] }
  0x1c   :  { %107 = vperm.xlu0 %194, %v100_v5  }
  0x8b   :  { %v45_v7 = vpop.xlane.xlu0 %44 }
  0x8c   :  { %v49_v8 = vmax.f32 %v47_v6, %v45_v7 }
  0x8e   :  { %v53_v10 = vsub.f32 %v47_v6, %v49_v8  ;;  %86 = vst.msk [vmem:[#allocation2 + $0x8] sm:$0xff] %vm23_vm0, %v49_v8  ;;  %67 = vperm.xlu1 %193, %v49_v8  }
  0x8f   :  { %v43_v11 = vpop.xlane.xlu0 %42 }
  0x90   :  { %v48_v12 = vmax.f32 %v46_v9, %v43_v11  ;;  %v56_v32 = vmul.f32 1.442695, %v53_v10 }
  0x92   :  { %v52_v13 = vsub.f32 %v46_v9, %v48_v12  ;;  %85 = vst.msk [vmem:[#allocation2] sm:$0xff] %vm23_vm0, %v48_v12  ;;  %62 = vperm.xlu1 %193, %v48_v12  }
  0x94   :  { %v54_v33 = vmul.f32 1.442695, %v52_v13 }
  0x95   :  { %v125_v59 = vld [vmem:[#allocation2 + $0x8] sm:$0xff] }
  0x96   :  { %104 = vperm.xlu1 %193, %v99_v14  }
  0x97   :  { %v108_v17 = vpop.permute.xlu0 %107 }
  0x98   :  { %vm110_vm1 = vcmp.eq.s32.totalorder %v35_v16, %v108_v17 }
  0x99   :  { %v112_v18 = vsel %vm110_vm1, %v33_v0, 0.0  ;;  %v124_v4 = vld [vmem:[#allocation2] sm:$0xff] }
  0x9a   :  { %115 = vadd.xlane.f32.xlu0 %v112_v18 }
 0x109   :  { %v68_v19 = vpop.permute.xlu1 %67 }
 0x10a   :  { %v71_v20 = vsub.f32 %v33_v0, %v68_v19 }
 0x10c   :  { %v74_v21 = vmul.f32 1.442695, %v71_v20 }
 0x10d   :  { %v63_v22 = vpop.permute.xlu1 %62 }
 0x10e   :  { %195 = vpow2.f32 %v74_v21  ;;  %v70_v23 = vsub.f32 %v32_v1, %v63_v22  ;;  %v159_v21 = vld [vmem:[#allocation6] sm:$0x1] }
 0x110   :  { %v72_v24 = vmul.f32 1.442695, %v70_v23 }
 0x111   :  { %v105_v27 = vpop.permute.xlu1 %104 }
 0x112   :  { %197 = vpow2.f32 %v72_v24  ;;  %vm109_vm2 = vcmp.eq.s32.totalorder %v35_v16, %v105_v27 }
 0x113   :  { %v111_v28 = vsel %vm109_vm2, %v32_v1, 0.0  ;;  %199 = vpow2.f32 %v56_v32 }
 0x114   :  { %201 = vpow2.f32 %v54_v33 }
 0x11b   :  { %v196_v25 = vpop.eup %195 }
 0x11c   :  { %78 = vadd.xlane.f32.xlu1 %v196_v25 }
 0x11f   :  { %v198_v26 = vpop.eup %197 }
 0x120   :  { %76 = vadd.xlane.f32.xlu1 %v198_v26  ;;  %v200_v34 = vpop.eup %199 }
 0x121   :  { %v59_v36 = vmul.f32 %v200_v34, %v51_v35  ;;  %v202_v37 = vpop.eup %201 }
 0x122   :  { %v58_v41 = vmul.f32 %v202_v37, %v50_v39 }
 0x123   :  { %v116_v29 = vpop.xlane.xlu0 %115 }
 0x124   :  { %93 = vadd.xlane.f32.xlu1 %v33_v0  ;;  %v118_v31 = vadd.f32 %v116_v29, %v102_v30 }
 0x126   :  { %120 = vst.msk [vmem:[#allocation5 + $0x8] sm:$0xff] %vm23_vm0, %v118_v31 }
 0x128   :  { %113 = vadd.xlane.f32.xlu1 %v111_v28 }
 0x12c   :  { %91 = vadd.xlane.f32.xlu1 %v32_v1 }
 0x12d   :  { %v135_v55 = vld [vmem:[#allocation5 + $0x8] sm:$0xff] }
 0x12e   :  { %v137_v58 = vmul.f32 0.9, %v135_v55 }
 0x1a5   :  { %v79_v38 = vpop.xlane.xlu1 %78 }
 0x1a6   :  { %v81_v40 = vadd.f32 %v79_v38, %v59_v36 }
 0x1a8   :  { %84 = vst.msk [vmem:[#allocation3 + $0x8] sm:$0xff] %vm23_vm0, %v81_v40 }
 0x1a9   :  { %v77_v42 = vpop.xlane.xlu1 %76 }
 0x1aa   :  { %v80_v43 = vadd.f32 %v77_v42, %v58_v41 }
 0x1ac   :  { %83 = vst.msk [vmem:[#allocation3] sm:$0xff] %vm23_vm0, %v80_v43 }
 0x1ad   :  { %v94_v45 = vpop.xlane.xlu1 %93 }
 0x1ae   :  { %v96_v46 = vadd.f32 %v94_v45, %v88_v44 }
 0x1af   :  { %v127_v48 = vld [vmem:[#allocation3 + $0x8] sm:$0xff] }
 0x1b0   :  { %98 = vst.msk [vmem:[#allocation4 + $0x8] sm:$0xff] %vm23_vm0, %v96_v46  ;;  %203 = vlog2.f32 %v127_v48 }
 0x1b1   :  { %v114_v49 = vpop.xlane.xlu1 %113 }
 0x1b2   :  { %v117_v50 = vadd.f32 %v114_v49, %v101_v47 }
 0x1b3   :  { %v126_v52 = vld [vmem:[#allocation3] sm:$0xff] }
 0x1b4   :  { %119 = vst.msk [vmem:[#allocation5] sm:$0xff] %vm23_vm0, %v117_v50  ;;  %205 = vlog2.f32 %v126_v52 }
 0x1b5   :  { %v92_v53 = vpop.xlane.xlu1 %91 }
 0x1b6   :  { %v95_v54 = vadd.f32 %v92_v53, %v87_v51 }
 0x1b7   :  { %v141_v60 = vld [vmem:[#allocation4 + $0x8] sm:$0xff] }
 0x1b8   :  { %97 = vst.msk [vmem:[#allocation4] sm:$0xff] %vm23_vm0, %v95_v54  ;;  %v143_v3 = vmul.f32 0.00078125, %v141_v60 }
 0x1bb   :  { %v134_v63 = vld [vmem:[#allocation5] sm:$0xff] }
 0x1bc   :  { %v136_v6 = vmul.f32 0.9, %v134_v63 }
 0x1bd   :  { %v204_v56 = vpop.eup %203 }
 0x1be   :  { %v131_v57 = vmul.f32 0.6931472, %v204_v56 }
 0x1bf   :  { %v140_v0 = vld [vmem:[#allocation4] sm:$0xff] }
 0x1c0   :  { %v133_v61 = vadd.f32 %v131_v57, %v125_v59  ;;  %v142_v7 = vmul.f32 0.00078125, %v140_v0 }
 0x1c1   :  { %v206_v62 = vpop.eup %205 }
 0x1c2   :  { %v129_v1 = vmul.f32 0.6931472, %v206_v62  ;;  %v139_v2 = vsub.f32 %v133_v61, %v137_v58 }
 0x1c4   :  { %v132_v5 = vadd.f32 %v129_v1, %v124_v4  ;;  %v145_v8 = vsub.f32 %v139_v2, %v143_v3 }
 0x1c6   :  { %v138_v9 = vsub.f32 %v132_v5, %v136_v6  ;;  %v161_v10 = vmul.f32 0.0, %v145_v8 }
 0x1c8   :  { %v144_v11 = vsub.f32 %v138_v9, %v142_v7  ;;  %v163_v13 = vsel %vm23_vm0, %v161_v10, 0.0 }
 0x1ca   :  { %v162_v12 = vsel %vm23_vm0, %v144_v11, 0.0 }
 0x1cb   :  { %v164_v14 = vadd.f32 %v163_v13, %v162_v12 }
 0x1cd   :  { %v165_v15 = vrot.slane %v164_v14, 4 }
 0x1cf   :  { %v166_v16 = vadd.f32 %v165_v15, %v164_v14 }
 0x1d1   :  { %v167_v17 = vrot.slane %v166_v16, 2 }
 0x1d3   :  { %v168_v18 = vadd.f32 %v167_v17, %v166_v16 }
 0x1d5   :  { %v169_v19 = vrot.slane %v168_v18, 1 }
 0x1d7   :  { %v170_v20 = vadd.f32 %v169_v19, %v168_v18 }
 0x1d9   :  { %v171_v22 = vmul.f32 0.125, %v170_v20 }
 0x1db   :  { %v172_v23 = vadd.f32 %v171_v22, %v159_v21 }
 0x1dd   :  { %174 = vst.msk [vmem:[#allocation6] sm:$0x1] %vm18_vm3, %v172_v23 }
 0x1de   :  { %218 = shalt.err (!%p215_p4)
}
 0x1df   :  { %184 = dma.vmem_to_hbm [thread:$0]  %s182_s16, 16, %s285_s2, [#allocation7]  }
 0x1e0   :  { %227 = dma.done.wait [#allocation7], 16  }
 0x1e1   :  { %228 = vsyncadd [#allocation7], 4294967280 }
 0x1e2   :  { %188 = vsyncpa [#allocation7], 1 }

</bundles_post_ra>
